<compile_context>
chip_gen: v6e
topology: v6e:2x2x1
jax: 0.10.0
libtpu: 0.0.40
codegen_flags: <defaults>
</compile_context>

<pallas_src>
import functools

import jax
import jax.numpy as jnp
from jax import lax
from jax.experimental import pallas as pl
from jax.experimental.pallas import tpu as pltpu


def _round_up(x, m):
    return (x + m - 1) // m * m


def _pick_pixel_tile(C, in_itemsize):
    """Budget-driven pixel-lane tile (multiple of 128).

    Per-pixel-column VMEM footprint (bytes), counted conservatively:
      * 2 double-buffered logits blocks in the native input dtype,
      * ~5 live (C, thw) f32 temporaries in the body
        (f32 cast, class iota, one-hot select, x - xmax, exp(x - xmax)),
      * double-buffered int32 targets + the f32 lane accumulator.
    """
    per_col = C * (2 * in_itemsize + 5 * 4) + 3 * 4
    budget = 24 * 1024 * 1024           # stays well under the 64 MiB limit below
    thw = budget // per_col
    thw = max(128, min(thw, 64 * 1024))
    return (thw // 128) * 128


# ----------------------------------------------------------------------------
# Pallas kernel
# ----------------------------------------------------------------------------
def _ce2d_kernel(x_ref, t_ref, o_ref, acc_ref, *, hw, thw, softmax):
    """Fused log_softmax/log_sigmoid + NLL over one (C, thw) pixel slab.

    x_ref : (1, C, thw)  native-dtype logits for one batch element / pixel tile
    t_ref : (1, 1, thw)  i32 target class per pixel
    o_ref : (1, 1, 128)  f32 per-batch partial (written once, at the last tile)
    acc_ref: (1, thw)    f32 lane-wide loss accumulator (scratch)
    """
    j = pl.program_id(1)

    @pl.when(j == 0)
    def _():
        acc_ref[...] = jnp.zeros_like(acc_ref)

    x = x_ref[0].astype(jnp.float32)          # (C, thw) f32 (in-kernel cast)
    t = t_ref[0]                              # (1, thw) i32

    # Lanes past HW in the (possibly partial) last block hold garbage: zero the
    # logits there so exp/logsumexp stay finite, and zero the loss below.
    lane = lax.broadcasted_iota(jnp.int32, (1, thw), 1)
    valid = (j * thw + lane) < hw             # (1, thw) bool
    x = jnp.where(valid, x, 0.0)

    # One-hot gather of the target logit via sublane iota (no HBM gather).
    cls_ids = lax.broadcasted_iota(jnp.int32, x.shape, 0)            # (C, thw)
    tgt = jnp.sum(jnp.where(cls_ids == t, x, 0.0), axis=0, keepdims=True)

    if softmax:
        # per-pixel loss = logsumexp_c(x) - x[target]
        xmax = jnp.max(x, axis=0, keepdims=True)
        lse = xmax + jnp.log(jnp.sum(jnp.exp(x - xmax), axis=0, keepdims=True))
        loss = lse - tgt
    else:
        # per-pixel loss = -logsigmoid(x[target]) = softplus(-x[target])
        z = -tgt
        loss = jnp.maximum(z, 0.0) + jnp.log(1.0 + jnp.exp(-jnp.abs(z)))

    # Lane-wide VPU accumulate; no per-step cross-lane reduce or scalar RMW.
    acc_ref[...] += jnp.where(valid, loss, 0.0)

    @pl.when(j == pl.num_programs(1) - 1)
    def _():
        s = jnp.sum(acc_ref[...], axis=1, keepdims=True)             # (1, 1)
        o_ref[...] = jnp.broadcast_to(s, (1, 128)).reshape(1, 1, 128)


# ----------------------------------------------------------------------------
# Wrapper (mirrors CrossEntropyLoss2d.forward with weight=None)
# ----------------------------------------------------------------------------
def cross_entropy_loss_2d(inputs_nchw, targets_nhw, *, softmax=True,
                          size_average=True):
    """loss = NLLLoss2d(log_softmax(inputs) if softmax else logsigmoid(inputs),
                        targets), weight=None."""
    N, C, H, W = inputs_nchw.shape
    assert targets_nhw.shape == (N, H, W)
    HW = H * W

    # Native dtype straight into the kernel (no wrapper-side f32 cast of the
    # big tensor); reshape NCHW -> (N, C, HW) is a free metadata change.
    x = inputs_nchw.reshape(N, C, HW)
    t = targets_nhw.reshape(N, 1, HW).astype(jnp.int32)

    if HW < 128:
        # Tiny spatial extent: pad to one 128-lane tile (copy is a few KiB).
        thw = 128
        x = jnp.pad(x, ((0, 0), (0, 0), (0, thw - HW)))
        t = jnp.pad(t, ((0, 0), (0, 0), (0, thw - HW)))
        hw_total = thw
    else:
        # Keep the block no wider than the array (partial last block is masked
        # in-kernel), so no full-tensor jnp.pad copy is ever needed.
        thw = min(_pick_pixel_tile(C, x.dtype.itemsize), (HW // 128) * 128)
        hw_total = HW

    grid = (N, pl.cdiv(hw_total, thw))

    out = pl.pallas_call(
        functools.partial(_ce2d_kernel, hw=HW, thw=thw, softmax=softmax),
        out_shape=jax.ShapeDtypeStruct((N, 1, 128), jnp.float32),
        grid=grid,
        in_specs=[
            pl.BlockSpec((1, C, thw), lambda n, j: (n, 0, j)),
            pl.BlockSpec((1, 1, thw), lambda n, j: (n, 0, j)),
        ],
        out_specs=pl.BlockSpec((1, 1, 128), lambda n, j: (n, 0, 0)),
        scratch_shapes=[pltpu.VMEM((1, thw), jnp.float32)],
        compiler_params=pltpu.CompilerParams(
            dimension_semantics=("parallel", "arbitrary"),
            vmem_limit_bytes=64 * 1024 * 1024),
    )(x, t)

    total = jnp.sum(out[:, 0, 0])          # sum the N per-batch partials
    if size_average:
        total = total / (N * HW)
    return total


# ----------------------------------------------------------------------------
# Pure-JAX reference
# ----------------------------------------------------------------------------
def ref_cross_entropy_loss_2d(inputs_nchw, targets_nhw, *, softmax=True,
                              size_average=True):
    if softmax:
        logp = jax.nn.log_softmax(inputs_nchw.astype(jnp.float32), axis=1)
    else:
        logp = jax.nn.log_sigmoid(inputs_nchw.astype(jnp.float32))
    picked = jnp.take_along_axis(
        logp, targets_nhw[:, None, :, :].astype(jnp.int32), axis=1)[:, 0]
    return -jnp.mean(picked) if size_average else -jnp.sum(picked)


def _close(a, b, atol=2e-5, rtol=1e-5):
    a, b = float(a), float(b)
    return abs(a - b) <= atol + rtol * abs(b)


if __name__ == "__main__":
    key = jax.random.PRNGKey(0)
    k1, k2, k3, k4 = jax.random.split(key, 4)

    # Small shapes consistent with the module: batch=2, classes=4, spatial=16.
    logits = jax.random.normal(k1, (2, 4, 16, 16), jnp.float32)
    targets = jax.random.randint(k2, (2, 16, 16), 0, 4, jnp.int32)

    # Default path: softmax=True, size_average=True.
    out = jax.block_until_ready(cross_entropy_loss_2d(logits, targets))
    ref = ref_cross_entropy_loss_2d(logits, targets)
    assert out.shape == (), out.shape
    assert _close(out, ref), (float(out), float(ref))

    # softmax=False path (logsigmoid + NLL) and size_average=False path.
    out_sig = jax.block_until_ready(
        cross_entropy_loss_2d(logits, targets, softmax=False))
    ref_sig = ref_cross_entropy_loss_2d(logits, targets, softmax=False)
    assert _close(out_sig, ref_sig), (float(out_sig), float(ref_sig))

    out_sum = jax.block_until_ready(
        cross_entropy_loss_2d(logits, targets, size_average=False))
    ref_sum = ref_cross_entropy_loss_2d(logits, targets, size_average=False)
    assert _close(out_sum, ref_sum, atol=2e-4), (float(out_sum), float(ref_sum))

    # Ragged spatial size (HW=100 < 128 -> tiny pad path + pixel mask).
    logits2 = jax.random.normal(k3, (2, 5, 10, 10), jnp.float32)
    targets2 = jax.random.randint(k4, (2, 10, 10), 0, 5, jnp.int32)
    out2 = jax.block_until_ready(cross_entropy_loss_2d(logits2, targets2))
    ref2 = ref_cross_entropy_loss_2d(logits2, targets2)
    assert _close(out2, ref2), (float(out2), float(ref2))

    # Native bf16 logits (no wrapper cast; kernel casts to f32 after the load).
    logits_bf = logits.astype(jnp.bfloat16)
    out_bf = jax.block_until_ready(cross_entropy_loss_2d(logits_bf, targets))
    ref_bf = ref_cross_entropy_loss_2d(logits_bf, targets)
    assert _close(out_bf, ref_bf, atol=1e-4), (float(out_bf), float(ref_bf))

    print("KERNEL_OK")
</pallas_src>

<mosaic_0001>
module attributes {stable_mosaic.version = 11 : i64} {
  func.func @_ce2d_kernel(%arg0: i32, %arg1: i32, %arg2: memref<1x4x256xf32, #tpu.memory_space<vmem>>, %arg3: memref<1x1x256xi32, #tpu.memory_space<vmem>>, %arg4: memref<1x1x128xf32, #tpu.memory_space<vmem>>, %arg5: memref<1x256xf32, #tpu.memory_space<vmem>>) attributes {dimension_semantics = [#tpu.dimension_semantics<parallel>, #tpu.dimension_semantics<arbitrary>], iteration_bounds = array<i64: 2, 1>, scalar_prefetch = 0 : i64, scratch_operands = 1 : i64, tpu.core_type = #tpu.core_type<tc>, window_params = [{transform_indices = @transform_0, window_bounds = array<i64: 1, 4, 256>}, {transform_indices = @transform_1, window_bounds = array<i64: 1, 1, 256>}, {transform_indices = @transform_2, window_bounds = array<i64: 1, 1, 128>}]} {
    %c0_i32 = arith.constant 0 : i32
    %0 = arith.cmpi eq, %arg1, %c0_i32 : i32
    %1 = arith.extui %0 : i1 to i32
    %c0_i32_0 = arith.constant 0 : i32
    %2 = arith.cmpi ne, %1, %c0_i32_0 : i32
    scf.if %2 {
      %cst_18 = arith.constant 0.000000e+00 : f32
      %42 = vector.broadcast %cst_18 : f32 to vector<1x256xf32>
      %c0_19 = arith.constant 0 : index
      %c0_20 = arith.constant 0 : index
      %43 = vector.load %arg5[%c0_19, %c0_20] : memref<1x256xf32, #tpu.memory_space<vmem>>, vector<1x256xf32>
      tpu.vector_store %arg5[%c0_19, %c0_20], %42 {strides = array<i32>} : memref<1x256xf32, #tpu.memory_space<vmem>>, vector<1x256xf32>,
    } else {
    }
    %c0 = arith.constant 0 : index
    %c0_1 = arith.constant 0 : index
    %c0_2 = arith.constant 0 : index
    %3 = vector.load %arg2[%c0, %c0_1, %c0_2] : memref<1x4x256xf32, #tpu.memory_space<vmem>>, vector<1x4x256xf32>
    %4 = vector.shape_cast %3 : vector<1x4x256xf32> to vector<4x256xf32>
    %c0_3 = arith.constant 0 : index
    %c0_4 = arith.constant 0 : index
    %c0_5 = arith.constant 0 : index
    %5 = vector.load %arg3[%c0_3, %c0_4, %c0_5] : memref<1x1x256xi32, #tpu.memory_space<vmem>>, vector<1x1x256xi32>
    %6 = vector.shape_cast %5 : vector<1x1x256xi32> to vector<1x256xi32>
    %7 = tpu.iota {dimensions = array<i32: 1>} : vector<1x256xi32>
    %c256_i32 = arith.constant 256 : i32
    %8 = arith.muli %arg1, %c256_i32 : i32
    %9 = vector.broadcast %8 : i32 to vector<1x256xi32>
    %10 = arith.addi %9, %7 : vector<1x256xi32>
    %c256_i32_6 = arith.constant 256 : i32
    %11 = vector.broadcast %c256_i32_6 : i32 to vector<1x256xi32>
    %12 = arith.cmpi slt, %10, %11 : vector<1x256xi32>
    %cst = arith.constant 0.000000e+00 : f32
    %13 = vector.shape_cast %12 : vector<1x256xi1> to vector<1x256xi1>
    %14 = vector.broadcast %13 : vector<1x256xi1> to vector<4x256xi1>
    %15 = vector.broadcast %cst : f32 to vector<4x256xf32>
    %16 = arith.select %14, %4, %15 : vector<4x256xi1>, vector<4x256xf32>
    %17 = tpu.iota {dimensions = array<i32: 0>} : vector<4x256xi32>
    %18 = vector.broadcast %6 : vector<1x256xi32> to vector<4x256xi32>
    %19 = arith.cmpi eq, %17, %18 : vector<4x256xi32>
    %cst_7 = arith.constant 0.000000e+00 : f32
    %20 = vector.broadcast %cst_7 : f32 to vector<4x256xf32>
    %21 = arith.select %19, %16, %20 : vector<4x256xi1>, vector<4x256xf32>
    %cst_8 = arith.constant dense<0.000000e+00> : vector<256xf32>
    %22 = vector.multi_reduction <add>, %21, %cst_8 [0] : vector<4x256xf32> to vector<256xf32>
    %23 = vector.shape_cast %22 : vector<256xf32> to vector<1x256xf32>
    %cst_9 = arith.constant dense<0xFF800000> : vector<256xf32>
    %24 = vector.multi_reduction <maximumf>, %16, %cst_9 [0] : vector<4x256xf32> to vector<256xf32>
    %25 = vector.shape_cast %24 : vector<256xf32> to vector<1x256xf32>
    %26 = vector.broadcast %25 : vector<1x256xf32> to vector<4x256xf32>
    %27 = arith.subf %16, %26 : vector<4x256xf32>
    %28 = math.exp %27 : vector<4x256xf32>
    %cst_10 = arith.constant dense<0.000000e+00> : vector<256xf32>
    %29 = vector.multi_reduction <add>, %28, %cst_10 [0] : vector<4x256xf32> to vector<256xf32>
    %30 = vector.shape_cast %29 : vector<256xf32> to vector<1x256xf32>
    %31 = math.log %30 : vector<1x256xf32>
    %32 = arith.addf %25, %31 : vector<1x256xf32>
    %33 = arith.subf %32, %23 : vector<1x256xf32>
    %c0_11 = arith.constant 0 : index
    %c0_12 = arith.constant 0 : index
    %34 = vector.load %arg5[%c0_11, %c0_12] : memref<1x256xf32, #tpu.memory_space<vmem>>, vector<1x256xf32>
    %cst_13 = arith.constant 0.000000e+00 : f32
    %35 = vector.broadcast %cst_13 : f32 to vector<1x256xf32>
    %36 = arith.select %12, %33, %35 : vector<1x256xi1>, vector<1x256xf32>
    %37 = arith.addf %34, %36 : vector<1x256xf32>
    %c0_14 = arith.constant 0 : index
    %c0_15 = arith.constant 0 : index
    %38 = vector.load %arg5[%c0_14, %c0_15] : memref<1x256xf32, #tpu.memory_space<vmem>>, vector<1x256xf32>
    tpu.vector_store %arg5[%c0_14, %c0_15], %37 {strides = array<i32>} : memref<1x256xf32, #tpu.memory_space<vmem>>, vector<1x256xf32>,
    %c0_i32_16 = arith.constant 0 : i32
    %39 = arith.cmpi eq, %arg1, %c0_i32_16 : i32
    %40 = arith.extui %39 : i1 to i32
    %c0_i32_17 = arith.constant 0 : i32
    %41 = arith.cmpi ne, %40, %c0_i32_17 : i32
    scf.if %41 {
      %c0_18 = arith.constant 0 : index
      %c0_19 = arith.constant 0 : index
      %42 = vector.load %arg5[%c0_18, %c0_19] : memref<1x256xf32, #tpu.memory_space<vmem>>, vector<1x256xf32>
      %cst_20 = arith.constant dense<0.000000e+00> : vector<1xf32>
      %43 = vector.multi_reduction <add>, %42, %cst_20 [1] : vector<1x256xf32> to vector<1xf32>
      %44 = vector.shape_cast %43 : vector<1xf32> to vector<1x1xf32>
      %45 = vector.shape_cast %44 : vector<1x1xf32> to vector<1x1xf32>
      %46 = vector.broadcast %45 : vector<1x1xf32> to vector<1x128xf32>
      %47 = vector.shape_cast %46 : vector<1x128xf32> to vector<1x1x128xf32>
      %c0_21 = arith.constant 0 : index
      %c0_22 = arith.constant 0 : index
      %c0_23 = arith.constant 0 : index
      %48 = vector.load %arg4[%c0_21, %c0_22, %c0_23] : memref<1x1x128xf32, #tpu.memory_space<vmem>>, vector<1x1x128xf32>
      tpu.vector_store %arg4[%c0_21, %c0_22, %c0_23], %47 {strides = array<i32>} : memref<1x1x128xf32, #tpu.memory_space<vmem>>, vector<1x1x128xf32>,
    } else {
    }
    return
  }
  func.func @transform_0(%arg0: i32, %arg1: i32) -> (i32, i32, i32) {
    %c0_i32 = arith.constant 0 : i32
    %c0_i32_0 = arith.constant 0 : i32
    return %arg0, %c0_i32, %arg1 : i32, i32, i32
  }
  func.func @transform_1(%arg0: i32, %arg1: i32) -> (i32, i32, i32) {
    %c0_i32 = arith.constant 0 : i32
    %c0_i32_0 = arith.constant 0 : i32
    return %arg0, %c0_i32, %arg1 : i32, i32, i32
  }
  func.func @transform_2(%arg0: i32, %arg1: i32) -> (i32, i32, i32) {
    %c0_i32 = arith.constant 0 : i32
    %c0_i32_0 = arith.constant 0 : i32
    %c0_i32_1 = arith.constant 0 : i32
    return %arg0, %c0_i32, %c0_i32_0 : i32, i32, i32
  }
}

</mosaic_0001>

<bundles_post_ra>
// kernel: tpu_custom_call.1
= control target key start
LH: loop header
LB: loop body
LE: loop exit
PB: predicated region body
PF: predicated region fallthrough
CT: control target
= control target key end

     0   :  { %7 = vsyncpa [#allocation4], 0  ;;  %s937_s0 = inlined_call_operand.hbm [shape: f32[2,4,256], index: 0, kind: input, shape index: {}]   ;;  %s938_s1 = inlined_call_operand.hbm [shape: s32[2,1,256], index: 1, kind: input, shape index: {}]   ;;  %s939_s2 = inlined_call_operand.hbm [shape: f32[2,1,128], index: 2, kind: output, shape index: {}]  }
   0x1   :  { %9 = vsyncpa [#allocation4 + $0x1], 0 }
   0x2   :  { %10 = vsyncpa [#allocation7], 0 }
   0x3   :  { %12 = vsyncpa [#allocation7 + $0x1], 0 }
   0x4   :  { %13 = vsyncpa [#allocation5], 0 }
   0x5   :  { %15 = vsyncpa [#allocation5 + $0x1], 0  ;;  %s742_s9 = smov 0   ;;  %s744_s10 = smov 0  }
   0x6   :  { %s746_s11 = smov 0   ;;  %s748_s12 = smov 0  }
   0x7   :  { %s750_s13 = smov 0   ;;  %s752_s14 = smov 0  }
   0x8 LB: > { %s484_s15 = sadd.s32 4294967295, %s720_s14   ;;  %s485_s16 = sadd.s32 4294967294, %s720_s14   ;;  %s720_s14 = sphi %s752_s14, %s21_s14   ;;  %s716_s13 = sphi %s750_s13, %s953_s13   ;;  %s712_s12 = sphi %s748_s12, %s952_s12   ;;  %s708_s11 = sphi %s746_s11, %s951_s11   ;;  %s704_s10 = sphi %s744_s10, %s950_s10   ;;  %s700_s9 = sphi %s742_s9, %s949_s9  }
   0x9   : > { %s33_s17 = sadd.s32 1, %s716_s13  ;;  %s42_s18 = sadd.s32 1, %s708_s11 }
   0xa   : > { %p35_p0 = scmp.ge.s32.totalorder %s33_s17, 2  ;;  %p49_p1 = scmp.ne.s32.totalorder %s708_s11, %s704_s10 }
   0xb   : > { %p50_p2 = scmp.eq.s32.totalorder %s720_s14, 0  ;;  %p55_p3 = scmp.ne.s32.totalorder %s704_s10, %s700_s9 }
   0xc   : > { %s955_s17 = smov (%p35_p0, %s33_s17), 0  ;;  %p56_p5 = scmp.eq.s32.totalorder %s484_s15, 0 }
   0xd   : > { %p783_p4 = por %p50_p2, %p49_p1  ;;  %s37_s20 = ssub.s32 %s716_s13, %s955_s17 }
   0xe   : > { %p107_p6 = scmp.eq.s32.totalorder %s484_s15, 1  ;;  %p40_p7 = scmp.eq.s32.totalorder %s37_s20, 0 }
   0xf   : > { %p789_p8 = por %p56_p5, %p55_p3  ;;  %p113_p10 = scmp.eq.s32.totalorder %s485_s16, 1 }
  0x10   : > { %p793_p9 = por %p107_p6, %p49_p1  ;;  %p519_p13 = scmp.lt.s32.totalorder %s720_s14, 2 }
  0x11   : > { %s798_s23 = scalar_select %p40_p7, %s708_s11, %s42_s18  }
  0x12   : > { %p800_p11 = por %p113_p10, %p55_p3  ;;  %s807_s25 = sand.u32 1, %s708_s11  }
  0x13   : > { %s488_s26 = sshll.u32 %s807_s25, 3  ;;  %s500_s27 = sshll.u32 %s716_s13, 7 }
  0x14   : > { %s145_s30 = scalar_lea.hbm %s937_s0, %s500_s27  ;;  %s137_s3 = scalar_lea.vmem [#allocation3], %s488_s26 }
  0x15   : > { %s147_s4 = sshll.u32 %s137_s3, 4  ;;  %p816_p0 = pnand %p519_p13, %p783_p4  ;;  %s148_s4 = int_to_ptr.vmem [resolvable:$true] %s147_s4 }
  0x16   : > { %p494_p1 = scmp.ge.s32.totalorder %s720_s14, 1  ;;  %p173_p2 = scmp.lt.s32.totalorder %s720_s14, 3 }
  0x17   : > { %s134_s6 = scalar_lea.sflag [#allocation4], %s807_s25  ;;  %p582_p3 = pneg %p816_p0 }
  0x18   : > { %s593_s7 = scalar_lea.vmem %s148_s4, 128  ;;  %s722_s8 = smov [#allocation3]  }
  0x19   : > { %p594_p5 = scmp.ne.s32.totalorder %s148_s4, %s593_s7  ;;  %s598_s15 = sshll.u32 %s722_s8, 4  ;;  %s599_s15 = int_to_ptr.vmem [resolvable:$false] %s598_s15 }
  0x1a   : > { %s600_s16 = scalar_lea.vmem %s599_s15, 256  ;;  %p601_p4 = scmp.lt.s32.totalorder %s148_s4, %s599_s15 }
  0x1b   : > { %p596_p6 = pnand %p594_p5, %p582_p3  ;;  %p602_p10 = scmp.lt.s32.totalorder %s600_s16, %s593_s7 }
  0x1d   : > { %p597_p7 = pneg %p596_p6  ;;  %p603_p13 = por %p602_p10, %p601_p4 }
  0x1f   : > { %p604_p12 = pnand %p603_p13, %p597_p7 }
  0x21   : > { %607 = shalt.err (!%p604_p12)
}
  0x22   : > { %511 = dma.hbm_to_vmem [thread:$0]  (!%p816_p0), %s145_s30, 128, %s148_s4, %s134_s6  }
  0x23   : > { %p834_p5 = pnand %p494_p1, %p173_p2  ;;  %s491_s19 = sshll.u32 %s807_s25, 1 }
  0x24   : > { %s501_s20 = sshll.u32 %s716_s13, 5  ;;  %s158_s29 = scalar_lea.vmem [#allocation6], %s491_s19 }
  0x25   : > { %s166_s28 = scalar_lea.hbm %s938_s1, %s501_s20  ;;  %s168_s3 = sshll.u32 %s158_s29, 4  ;;  %s169_s3 = int_to_ptr.vmem [resolvable:$true] %s168_s3 }
  0x26   : > { %s155_s7 = scalar_lea.sflag [#allocation7], %s807_s25  ;;  %s621_s8 = scalar_lea.vmem %s169_s3, 32 }
  0x27   : > { %p622_p12 = scmp.ne.s32.totalorder %s169_s3, %s621_s8  ;;  %s723_s30 = smov [#allocation6]  }
  0x28   : > { %s626_s4 = sshll.u32 %s723_s30, 4  ;;  %s627_s4 = int_to_ptr.vmem [resolvable:$false] %s626_s4 }
  0x29   : > { %p624_p6 = pnand %p622_p12, %p582_p3  ;;  %s628_s6 = scalar_lea.vmem %s627_s4, 64 }
  0x2a   : > { %p629_p1 = scmp.lt.s32.totalorder %s169_s3, %s627_s4  ;;  %p630_p2 = scmp.lt.s32.totalorder %s628_s6, %s621_s8 }
  0x2b   : > { %p625_p7 = pneg %p624_p6 }
  0x2c   : > { %p631_p4 = por %p630_p2, %p629_p1 }
  0x2e   : > { %p632_p10 = pnand %p631_p4, %p625_p7 }
  0x30   : > { %635 = shalt.err (!%p632_p10)
}
  0x31   : > { %514 = dma.hbm_to_vmem [thread:$0]  (!%p816_p0), %s166_s28, 32, %s169_s3, %s155_s7  }
  0x32   : > { %177 = sbr.rel (%p834_p5) target bundleno = 298 (0x12a), region = 28  ;;  %s852_s25 = sand.u32 (!%p834_p5), 1, %s704_s10  }
  0x33   : > { %s495_s15 = sshll.u32 (!%p834_p5), %s852_s25, 3  ;;  %s180_s16 = scalar_lea.sflag (!%p834_p5), [#allocation4], %s852_s25 }
  0x34   : > { %s183_s19 = scalar_lea.vmem (!%p834_p5), [#allocation3], %s495_s15 }
  0x37   : > { %687 = dma.done.wait (%p789_p8), %s180_s16, 128  }
  0x38   : > { %689 = vsyncadd (%p789_p8), %s180_s16, 4294967168  ;;  %s496_s5 = sshll.u32 %s852_s25, 1  ;;  %s189_s18 = scalar_lea.sflag [#allocation7], %s852_s25 }
  0x39   : > { %s862_s20 = scalar_lea.vmem [#allocation6], %s496_s5 }
  0x3a   : > { %691 = dma.done.wait (%p789_p8), %s189_s18, 32  }
  0x3b   : > { %693 = vsyncadd (%p789_p8), %s189_s18, 4294967264  ;;  %v223_v0 = vlaneseq  ;;  %v724_v2 = vmov 0.0   ;;  %vm262_vm1 = vcmask 1043456   ;;  %v228_v3 = vld [vmem:[%s183_s19] sm:$0xff]  ;;  %v229_v25 = vld [vmem:[%s862_s20] sm:$0x3] }
  0x3c   : > { %v244_v4 = vcombine.high %v228_v3, %v228_v3  ;;  %v277_v5 = vsel %vm262_vm1, %v228_v3, -inf  ;;  %v725_v59 = vmov 1966171168   ;;  %vm361_vm4 = vcmask 1040384   ;;  %s216_s21 = scalar_lea.vmem [#allocation8], %s852_s25  ;;  %s497_s27 = sshll.u32 %s712_s12, 4 }
  0x3d   : > { %vm868_vm0 = vcmp.lt.s32.totalorder %v223_v0, 256  ;;  %v278_v6 = vrot.slane %v277_v5, 4  ;;  %v876_v22 = vshrl.u32 %v223_v0, 7  ;;  %v326_v60 = vunpack.c.l.s4 %v725_v59  ;;  %s381_s26 = sshll.u32 %s216_s21, 4  ;;  %s379_s3 = scalar_lea.hbm %s939_s2, %s497_s27  ;;  %s892_s26 = int_to_ptr.vmem [resolvable:$true] %s381_s26 }
  0x3e   : > { %227 = vst.msk [vmem:[#allocation2] sm:$0x3] %vm868_vm0, %v724_v2  ;;  %v284_v7 = vsel %vm262_vm1, %v244_v4, -inf  ;;  %s369_s7 = scalar_lea.sflag [#allocation5], %s852_s25  ;;  %s636_s8 = scalar_lea.vmem %s892_s26, 16 }
  0x3f   : > { %v279_v8 = vmax.f32 %v277_v5, %v278_v6  ;;  %v285_v9 = vrot.slane %v284_v7, 4  ;;  %v252_v24 = vsub.s32 0, %v876_v22  ;;  %v256_v26 = vsub.s32 1, %v876_v22  ;;  %p637_p8 = scmp.ne.s32.totalorder %s892_s26, %s636_s8  ;;  %s726_s30 = smov [#allocation8]  }
  0x40   : > { %v327_v5 = vunpack.c.0.s8 %v326_v60  ;;  %s640_s4 = sshll.u32 %s726_s30, 4  ;;  %s641_s4 = int_to_ptr.vmem [resolvable:$false] %s640_s4 }
  0x41   : > { %v280_v10 = vrot.slane %v279_v8, 2  ;;  %v286_v11 = vmax.f32 %v284_v7, %v285_v9  ;;  %v253_v27 = vrot.slane %v229_v25, %v252_v24  ;;  %v257_v28 = vrot.slane %v229_v25, %v256_v26  ;;  %p638_p0 = pnand %p637_p8, %p793_p9  ;;  %s642_s12 = scalar_lea.vmem %s641_s4, 32 }
  0x42   : > { %v330_v9 = vsub.s32 %v327_v5, %v876_v22  ;;  %p643_p13 = scmp.lt.s32.totalorder %s892_s26, %s641_s4  ;;  %p644_p5 = scmp.lt.s32.totalorder %s642_s12, %s636_s8 }
  0x43   : > { %v281_v12 = vmax.f32 %v279_v8, %v280_v10  ;;  %v287_v13 = vrot.slane %v286_v11, 2  ;;  %vm258_vm2 = vcmp.eq.s32.totalorder %v876_v22, %v253_v27  ;;  %vm259_vm3 = vcmp.eq.s32.totalorder %v876_v22, %v257_v28  ;;  %p639_p3 = pneg %p638_p0 }
  0x44   : > { %v260_v32 = vsel %vm258_vm2, %v228_v3, 0.0  ;;  %v261_v35 = vsel %vm259_vm3, %v244_v4, 0.0  ;;  %p645_p12 = por %p644_p5, %p643_p13 }
  0x45   : > { %v282_v14 = vrot.slane %v281_v12, 1  ;;  %v288_v15 = vmax.f32 %v286_v11, %v287_v13  ;;  %v263_v38 = vsel %vm262_vm1, %v260_v32, 0.0  ;;  %v270_v41 = vsel %vm262_vm1, %v261_v35, 0.0 }
  0x46   : > { %v264_v42 = vrot.slane %v263_v38, 4  ;;  %v271_v45 = vrot.slane %v270_v41, 4  ;;  %p646_p6 = pnand %p645_p12, %p639_p3 }
  0x47   : > { %v283_v16 = vmax.f32 %v281_v12, %v282_v14  ;;  %v289_v17 = vrot.slane %v288_v15, 1  ;;  %v319_v12 = vld [vmem:[#allocation2] sm:$0x3] }
  0x48   : > { %v265_v48 = vadd.f32 %v264_v42, %v263_v38  ;;  %v272_v51 = vadd.f32 %v271_v45, %v270_v41 }
  0x49   : > { %v290_v18 = vmax.f32 %v288_v15, %v289_v17  ;;  %v291_v19 = vsub.f32 %v228_v3, %v283_v16 }
  0x4a   : > { %v266_v53 = vrot.slane %v265_v48, 2  ;;  %v273_v54 = vrot.slane %v272_v51, 2 }
  0x4b   : > { %v292_v20 = vsub.f32 %v244_v4, %v290_v18  ;;  %v293_v21 = vmul.f32 1.442695, %v291_v19 }
  0x4c   : > { %v267_v55 = vadd.f32 %v266_v53, %v265_v48  ;;  %v274_v56 = vadd.f32 %v273_v54, %v272_v51 }
  0x4d   : > { %572 = vpow2.f32 %v293_v21  ;;  %v295_v23 = vmul.f32 1.442695, %v292_v20 }
  0x4e   : > { %v268_v57 = vrot.slane %v267_v55, 1  ;;  %v275_v58 = vrot.slane %v274_v56, 1 }
  0x4f   : > { %574 = vpow2.f32 %v295_v23 }
  0x50   : > { %v269_v62 = vadd.f32 %v268_v57, %v267_v55  ;;  %v276_v2 = vadd.f32 %v275_v58, %v274_v56 }
  0x5a   : > { %v573_v29 = vpop.eup %572 }
  0x5b   : > { %v297_v30 = vsel %vm262_vm1, %v573_v29, 0.0 }
  0x5c   : > { %v575_v31 = vpop.eup %574  ;;  %v298_v33 = vrot.slane %v297_v30, 4 }
  0x5d   : > { %v304_v34 = vsel %vm262_vm1, %v575_v31, 0.0 }
  0x5e   : > { %v299_v36 = vadd.f32 %v298_v33, %v297_v30  ;;  %v305_v37 = vrot.slane %v304_v34, 4 }
  0x60   : > { %v300_v39 = vrot.slane %v299_v36, 2  ;;  %v306_v40 = vadd.f32 %v305_v37, %v304_v34 }
  0x62   : > { %v301_v43 = vadd.f32 %v300_v39, %v299_v36  ;;  %v307_v44 = vrot.slane %v306_v40, 2 }
  0x64   : > { %v302_v46 = vrot.slane %v301_v43, 1  ;;  %v308_v47 = vadd.f32 %v307_v44, %v306_v40 }
  0x66   : > { %v303_v49 = vadd.f32 %v302_v46, %v301_v43  ;;  %v309_v50 = vrot.slane %v308_v47, 1 }
  0x68   : > { %v310_v52 = vadd.f32 %v309_v50, %v308_v47  ;;  %576 = vlog2.f32 %v303_v49 }
  0x6a   : > { %578 = vlog2.f32 %v310_v52 }
  0x75   : > { %v577_v61 = vpop.eup %576 }
  0x76   : > { %v312_v63 = vmul.f32 0.6931472, %v577_v61 }
  0x77   : > { %v579_v0 = vpop.eup %578 }
  0x78   : > { %v314_v3 = vmul.f32 0.6931472, %v579_v0  ;;  %v315_v4 = vadd.f32 %v312_v63, %v283_v16 }
  0x7a   : > { %v316_v6 = vadd.f32 %v314_v3, %v290_v18  ;;  %v317_v7 = vsub.f32 %v315_v4, %v269_v62 }
  0x7c   : > { %v318_v8 = vsub.f32 %v316_v6, %v276_v2 }
  0x7e   : > { %v324_v10 = vcombine.low %v317_v7, %v318_v8 }
  0x80   : > { %v331_v11 = vrot.slane %v324_v10, %v330_v9 }
  0x82   : > { %v338_v13 = vrot.slane %v331_v11, %v330_v9 }
  0x84   : > { %v340_v14 = vadd.f32 %v338_v13, %v319_v12 }
  0x86   : > { %345 = vst.msk [vmem:[#allocation2] sm:$0x3] %vm868_vm0, %v340_v14 }
  0x8d   : > { %v349_v15 = vld [vmem:[#allocation2] sm:$0x3] }
  0x8e   : > { %v354_v16 = vrot.slane %v349_v15, %v252_v24  ;;  %v358_v17 = vrot.slane %v349_v15, %v256_v26 }
  0x90   : > { %v362_v18 = vsel %vm361_vm4, %v354_v16, 0.0  ;;  %v363_v19 = vsel %vm361_vm4, %v358_v17, 0.0 }
  0x91   : > { %v364_v20 = vadd.f32 %v363_v19, %v362_v18 }
  0x93   : > { %365 = vadd.xlane.f32.xlu0 %v364_v20 }
 0x11c   : > { %v366_v1 = vpop.xlane.xlu0 %365 }
 0x11d   : > { %367 = vst [vmem:[%s216_s21] sm:$0x1] %v366_v1 }
 0x11e   : > { %649 = shalt.err (!%p646_p6)
}
 0x11f   : > { %s650_s6 = scalar_lea.hbm %s379_s3, 16  ;;  %s654_s16 = scalar_lea.hbm %s939_s2, 32 }
 0x120   : > { %p651_p7 = scmp.ne.s32.totalorder %s379_s3, %s650_s6  ;;  %p655_p4 = scmp.lt.s32.totalorder %s379_s3, %s939_s2 }
 0x121   : > { %p656_p10 = scmp.lt.s32.totalorder %s654_s16, %s650_s6 }
 0x122   : > { %p652_p1 = pnand %p651_p7, %p793_p9 }
 0x123   : > { %p657_p8 = por %p656_p10, %p655_p4 }
 0x124   : > { %p653_p2 = pneg %p652_p1 }
 0x126   : > { %p658_p0 = pnand %p657_p8, %p653_p2 }
 0x128   : > { %661 = shalt.err (!%p658_p0)
}
 0x129   : > { %506 = dma.vmem_to_hbm [thread:$0]  (%p793_p9), %s892_s26, 16, %s379_s3, %s369_s7  }
 0x12a PF: > { %s393_s18 = sand.u32 1, %s700_s9   ;;  %p948_p3 = scmp.ge.s32.totalorder %s720_s14, 2 }
 0x12b   : > { %s394_s20 = scalar_lea.sflag [#allocation5], %s393_s18 }
 0x12c   : > { %p516_p13 = pnand %p948_p3, %p800_p11 }
 0x12e   : > { %p517_p5 = pneg %p516_p13 }
 0x130   : > { %695 = dma.done.wait (%p517_p5), %s394_s20, 16  }
 0x131   : > { %697 = vsyncadd (%p517_p5), %s394_s20, 4294967280  ;;  %s21_s14 = sadd.s32 1, %s720_s14   ;;  %s949_s9 = smov %s704_s10 }
 0x132   : > { %p18_p12 = scmp.ge.s32.totalorder %s21_s14, 4   ;;  %s950_s10 = smov %s708_s11 }
 0x133   : > { %s951_s11 = smov %s798_s23  ;;  %s952_s12 = smov %s716_s13 }
 0x134   : > { %s953_s13 = smov %s955_s17  ;;  %20 = sbr.rel (!%p18_p12) target bundleno = 8 (0x8), region = 94 }
 0x139   :  { %398 = vsyncpa [#allocation4], 1 }
 0x13a   :  { %400 = vsyncpa [#allocation4 + $0x1], 1 }
 0x13b   :  { %401 = vsyncpa [#allocation7], 1 }
 0x13c   :  { %403 = vsyncpa [#allocation7 + $0x1], 1 }
 0x13d   :  { %404 = vsyncpa [#allocation5], 1 }
 0x13e   :  { %406 = vsyncpa [#allocation5 + $0x1], 1 }

</bundles_post_ra>
